<compile_context>
chip_gen: v6e
topology: v6e:2x2x1
jax: 0.10.0
libtpu: 0.0.40
codegen_flags: <defaults>
</compile_context>

<pallas_src>
import functools

import jax
import jax.numpy as jnp
from jax.experimental import pallas as pl
from jax.experimental.pallas import tpu as pltpu


# ----------------------------- Pallas kernel -------------------------------

def node_fused_kernel(x_ref, w_ref, b_ref, h_ref, proj_ref):
    # x: [tn, in_dim]   w: [in_dim, G + 2K]   b: [1, G + 2K]
    out = jnp.dot(x_ref[...], w_ref[...], preferred_element_type=jnp.float32)
    out = out + b_ref[...]
    g = h_ref.shape[1]
    h_ref[...] = out[:, :g].astype(h_ref.dtype)          # node features
    proj_ref[...] = out[:, g:].astype(proj_ref.dtype)    # [pd | ps] gate table


# ------------------------------- wrappers -----------------------------------

def _pick_tile(n, target, align=8):
    """Largest align-multiple tile <= min(n, target); guarantees >= 2 grid
    steps when the array is big enough to split (v7x megacore sharding)."""
    if n <= 2 * align:
        return n
    t = min(target, n)
    if t >= n:                       # would be a single grid step -> split in 2
        t = -(-n // 2)
    t = max(align, (t // align) * align)
    return min(t, n)


def node_projections(x, lin_w, lin_b, gate_w, gate_b, *, node_tile=2048):
    """One fused matmul per node tile.

    Returns:
      h    [N, G]   : Linear(in_dim, graph_dim)(x)
      proj [N, 2K]  : columns [:K]  = pd = Wd.h + bg   (dst half of each gate,
                                                        bias folded in)
                      columns [K:]  = ps = Ws.h        (src half)
    """
    N, in_dim = x.shape
    G = lin_w.shape[0]
    K = gate_w.shape[0]

    wl = lin_w.T                                  # [in_dim, G]  (one-time)
    bl = lin_b.reshape(1, G)
    # cat order in edge_applying is [edges.dst['h'], edges.src['h']]
    wd = gate_w[:, :G]                            # dst half  [K, G]
    ws = gate_w[:, G:]                            # src half  [K, G]

    # Fold the gate projections through the input linear (exact, linear algebra).
    w_all = jnp.concatenate([wl, wl @ wd.T, wl @ ws.T], axis=1)       # [in_dim, G+2K]
    b_all = jnp.concatenate(
        [bl, bl @ wd.T + gate_b.reshape(1, K), bl @ ws.T], axis=1)    # [1, G+2K]

    tn = _pick_tile(N, node_tile)
    const = lambda i: (0, 0)

    return pl.pallas_call(
        node_fused_kernel,
        out_shape=(jax.ShapeDtypeStruct((N, G), jnp.float32),         # h
                   jax.ShapeDtypeStruct((N, 2 * K), jnp.float32)),    # proj
        grid=(pl.cdiv(N, tn),),
        in_specs=[pl.BlockSpec((tn, in_dim), lambda i: (i, 0)),
                  pl.BlockSpec((in_dim, G + 2 * K), const),
                  pl.BlockSpec((1, G + 2 * K), const)],
        out_specs=(pl.BlockSpec((tn, G), lambda i: (i, 0)),
                   pl.BlockSpec((tn, 2 * K), lambda i: (i, 0))),
        compiler_params=pltpu.CompilerParams(
            dimension_semantics=("parallel",)),
    )(x, w_all, b_all)


def graph_learning_forward(x, src_ids, dst_ids, params, *, node_tile=2048):
    """Returns (h [N, graph_dim], factors [num_graph, E]).

    factors[num] corresponds to g.edata[f'factor_{num}'] of the PyTorch module.
    """
    K = params["gate_w"].shape[0]
    h, proj = node_projections(x, params["lin_w"], params["lin_b"],
                               params["gate_w"], params["gate_b"],
                               node_tile=node_tile)
    # Edge pass: row gather + add + sigmoid stay in plain JAX so XLA fuses them
    # into the gather (no [K, E] HBM temporaries, no extra kernel launch, and a
    # cheap row gather instead of a minor-axis gather).
    pd_dst = proj[dst_ids, :K]                    # [E, K]
    ps_src = proj[src_ids, K:]                    # [E, K]
    factors = jax.nn.sigmoid(pd_dst + ps_src)     # [E, K]
    return h, factors.T                           # [num_graph, E]


# ------------------------------- reference ----------------------------------

def reference_forward(x, src_ids, dst_ids, params):
    h = x @ params["lin_w"].T + params["lin_b"]
    cat = jnp.concatenate([h[dst_ids], h[src_ids]], axis=1)
    logits = cat @ params["gate_w"].T + params["gate_b"]
    return h, jax.nn.sigmoid(logits)              # [N, G], [E, K]


# --------------------------------- main --------------------------------------

if __name__ == "__main__":
    in_dim, graph_dim, num_graph = 16, 32, 4
    N, E = 256, 512   # nodes, edges (small, but enough to exercise tiling)

    key = jax.random.PRNGKey(0)
    k_x, k_w, k_b, k_gw, k_gb, k_src, k_dst = jax.random.split(key, 7)

    x = jax.random.normal(k_x, (N, in_dim), dtype=jnp.float32)
    src_ids = jax.random.randint(k_src, (E,), 0, N)
    dst_ids = jax.random.randint(k_dst, (E,), 0, N)

    params = {
        # nn.Linear(in_dim, graph_dim): weight [graph_dim, in_dim], bias [graph_dim]
        "lin_w": 0.1 * jax.random.normal(k_w, (graph_dim, in_dim), dtype=jnp.float32),
        "lin_b": 0.1 * jax.random.normal(k_b, (graph_dim,), dtype=jnp.float32),
        # num_graph x nn.Linear(2*graph_dim, 1) stacked: [num_graph, 2*graph_dim]
        "gate_w": 0.1 * jax.random.normal(k_gw, (num_graph, 2 * graph_dim), dtype=jnp.float32),
        "gate_b": 0.1 * jax.random.normal(k_gb, (num_graph,), dtype=jnp.float32),
    }

    # Small tile so the test runs a multi-step pipelined grid (N=256 -> 2 steps).
    fwd = jax.jit(functools.partial(graph_learning_forward, node_tile=128))
    h, factors = fwd(x, src_ids, dst_ids, params)
    jax.block_until_ready((h, factors))

    h_ref, f_ref = reference_forward(x, src_ids, dst_ids, params)
    assert h.shape == (N, graph_dim) and factors.shape == (num_graph, E)
    assert jnp.allclose(h, h_ref, atol=2e-5, rtol=1e-4)
    assert jnp.allclose(factors, f_ref.T, atol=2e-5, rtol=1e-4)

    print("KERNEL_OK")
</pallas_src>

<mosaic_0001>
module attributes {stable_mosaic.version = 11 : i64} {
  func.func @node_fused_kernel(%arg0: i32, %arg1: memref<128x16xf32, #tpu.memory_space<vmem>>, %arg2: memref<16x40xf32, #tpu.memory_space<vmem>>, %arg3: memref<1x40xf32, #tpu.memory_space<vmem>>, %arg4: memref<128x32xf32, #tpu.memory_space<vmem>>, %arg5: memref<128x8xf32, #tpu.memory_space<vmem>>) attributes {dimension_semantics = [#tpu.dimension_semantics<parallel>], iteration_bounds = array<i64: 2>, scalar_prefetch = 0 : i64, scratch_operands = 0 : i64, tpu.core_type = #tpu.core_type<tc>, window_params = [{transform_indices = @transform_0, window_bounds = array<i64: 128, 16>}, {pipeline_mode = #tpu.pipeline_mode<synchronous>, transform_indices = @transform_1, window_bounds = array<i64: 16, 40>}, {pipeline_mode = #tpu.pipeline_mode<synchronous>, transform_indices = @transform_2, window_bounds = array<i64: 1, 40>}, {transform_indices = @transform_3, window_bounds = array<i64: 128, 32>}, {transform_indices = @transform_4, window_bounds = array<i64: 128, 8>}]} {
    %c0 = arith.constant 0 : index
    %c0_0 = arith.constant 0 : index
    %0 = vector.load %arg1[%c0, %c0_0] : memref<128x16xf32, #tpu.memory_space<vmem>>, vector<128x16xf32>
    %c0_1 = arith.constant 0 : index
    %c0_2 = arith.constant 0 : index
    %1 = vector.load %arg2[%c0_1, %c0_2] : memref<16x40xf32, #tpu.memory_space<vmem>>, vector<16x40xf32>
    %cst = arith.constant dense<0.000000e+00> : vector<128x40xf32>
    %2 = tpu.matmul %0, %1, %cst {dimension_numbers = #tpu.dot_dimension_numbers<[1], [0], [0], [1], [0, 0, 1, 1], [], []>} : vector<128x16xf32>, vector<16x40xf32>, vector<128x40xf32> -> vector<128x40xf32>
    %c0_3 = arith.constant 0 : index
    %c0_4 = arith.constant 0 : index
    %3 = vector.load %arg3[%c0_3, %c0_4] : memref<1x40xf32, #tpu.memory_space<vmem>>, vector<1x40xf32>
    %4 = vector.broadcast %3 : vector<1x40xf32> to vector<128x40xf32>
    %5 = arith.addf %2, %4 : vector<128x40xf32>
    %6 = vector.extract_strided_slice %5 {offsets = [0, 0], sizes = [128, 32], strides = [1, 1]} : vector<128x40xf32> to vector<128x32xf32>
    %c0_5 = arith.constant 0 : index
    %c0_6 = arith.constant 0 : index
    %7 = vector.load %arg4[%c0_5, %c0_6] : memref<128x32xf32, #tpu.memory_space<vmem>>, vector<128x32xf32>
    tpu.vector_store %arg4[%c0_5, %c0_6], %6 {strides = array<i32>} : memref<128x32xf32, #tpu.memory_space<vmem>>, vector<128x32xf32>,
    %8 = vector.extract_strided_slice %5 {offsets = [0, 32], sizes = [128, 8], strides = [1, 1]} : vector<128x40xf32> to vector<128x8xf32>
    %c0_7 = arith.constant 0 : index
    %c0_8 = arith.constant 0 : index
    %9 = vector.load %arg5[%c0_7, %c0_8] : memref<128x8xf32, #tpu.memory_space<vmem>>, vector<128x8xf32>
    tpu.vector_store %arg5[%c0_7, %c0_8], %8 {strides = array<i32>} : memref<128x8xf32, #tpu.memory_space<vmem>>, vector<128x8xf32>,
    return
  }
  func.func @transform_0(%arg0: i32) -> (i32, i32) {
    %c0_i32 = arith.constant 0 : i32
    %c0_i32_0 = arith.constant 0 : i32
    return %arg0, %c0_i32 : i32, i32
  }
  func.func @transform_1(%arg0: i32) -> (i32, i32) {
    %c0_i32 = arith.constant 0 : i32
    %c0_i32_0 = arith.constant 0 : i32
    %c0_i32_1 = arith.constant 0 : i32
    return %c0_i32, %c0_i32_0 : i32, i32
  }
  func.func @transform_2(%arg0: i32) -> (i32, i32) {
    %c0_i32 = arith.constant 0 : i32
    %c0_i32_0 = arith.constant 0 : i32
    %c0_i32_1 = arith.constant 0 : i32
    return %c0_i32, %c0_i32_0 : i32, i32
  }
  func.func @transform_3(%arg0: i32) -> (i32, i32) {
    %c0_i32 = arith.constant 0 : i32
    %c0_i32_0 = arith.constant 0 : i32
    return %arg0, %c0_i32 : i32, i32
  }
  func.func @transform_4(%arg0: i32) -> (i32, i32) {
    %c0_i32 = arith.constant 0 : i32
    %c0_i32_0 = arith.constant 0 : i32
    return %arg0, %c0_i32 : i32, i32
  }
}

</mosaic_0001>

<bundles_post_ra>
// kernel: graph_learning_forward.1
= control target key start
LH: loop header
LB: loop body
LE: loop exit
PB: predicated region body
PF: predicated region fallthrough
CT: control target
= control target key end

     0   :  { %s745_s15 = smov 0   ;;  %s879_s0 = inlined_call_operand.vmem [shape: f32[256,16], index: 0, kind: input, shape index: {}]   ;;  %s880_s1 = inlined_call_operand.vmem [shape: f32[16,40], index: 1, kind: input, shape index: {}]   ;;  %s881_s2 = inlined_call_operand.vmem [shape: f32[1,40], index: 2, kind: input, shape index: {}]   ;;  %s882_s3 = inlined_call_operand.vmem [shape: f32[256,32], index: 3, kind: output, shape index: {0}]   ;;  %s883_s4 = inlined_call_operand.vmem [shape: f32[256,8], index: 4, kind: output, shape index: {1}]  }
   0x1 LB: > { %s622_s16 = sadd.s32 4294967295, %s717_s15   ;;  %p626_p0 = scmp.ge.s32.totalorder %s717_s15, 1  ;;  %s717_s15 = sphi %s745_s15, %s15_s15  }
   0x2   : > { %p166_p1 = scmp.lt.s32.totalorder %s717_s15, 3 }
   0x4   : > { %p167_p2 = pnand %p626_p0, %p166_p1 }
   0x5   : > { %s627_s21 = sshll.u32 (!%p167_p2), %s622_s16, 4  ;;  %s719_s5 = smov (!%p167_p2), 96  }
   0x6   : > { %170 = sbr.rel (%p167_p2) target bundleno = 356 (0x164), region = 32  ;;  %p198_p3 = scmp.lt.s32.totalorder (!%p167_p2), %s627_s21, 31 }
   0xb   : > { %v232_v0 = vld [vmem:[%s880_s1 + $0x8] sm:$0xff]  ;;  %v231_v1 = vld [vmem:[%s880_s1] sm:$0xff]  ;;  %s885_s21 = smov (!%p198_p3, %s627_s21), 31  ;;  %vm240_vm0 = vcmask 130048   ;;  %vm434_vm1 = vcmask 261120   ;;  %vm515_vm2 = vcmask 64512  }
   0xc   : > { %670 = vmatprep.subr.mxu0 %v232_v0  ;;  %698 = vmatprep.subr.mxu1 %v232_v0  ;;  %s759_s22 = sshll.u32 %s885_s21, 3  ;;  %v633_v18 = vld [vmem:[%s881_s2] ss:$0 sm:$0xff] }
   0xd   : > { %671 = vmatpush3.msra.mxu0 %v232_v0  ;;  %700 = vmatpush3.msra.mxu1 %v232_v0  ;;  %s201_s25 = scalar_lea.vmem %s879_s0, %s759_s22  ;;  %s788_s30 = scalar_lea.vmem %s882_s3, %s759_s22 }
   0xe   : > { %672 = vmatprep.subr.mxu0 %v231_v1  ;;  %699 = vmatprep.subr.mxu1 %v231_v1  ;;  %v215_v2 = vld [vmem:[%s201_s25] sm:$0xff]  ;;  %v216_v4 = vld [vmem:[%s201_s25 + $0x8] sm:$0xff]  ;;  %v217_v6 = vld [vmem:[%s201_s25 + $0x10] sm:$0xff]  ;;  %s842_s8 = scalar_lea.vmem %s883_s4, %s759_s22 }
   0xf   : > { %673 = vmatpush3.msra.mxu0 %v231_v1  ;;  %701 = vmatpush3.msra.mxu1 %v231_v1  ;;  %v223_v3 = vld [vmem:[%s201_s25 + $0x40] sm:$0xff]  ;;  %v224_v5 = vld [vmem:[%s201_s25 + $0x48] sm:$0xff]  ;;  %v225_v7 = vld [vmem:[%s201_s25 + $0x50] sm:$0xff] }
  0x10   : > { %674 = vmatprep.mubr.msk.f32.mxu0 %vm240_vm0, %v215_v2  ;;  %686 = vmatprep.mubr.msk.f32.mxu1 %vm240_vm0, %v223_v3  ;;  %v218_v8 = vld [vmem:[%s201_s25 + $0x18] sm:$0xff]  ;;  %v219_v10 = vld [vmem:[%s201_s25 + $0x20] sm:$0xff]  ;;  %v220_v12 = vld [vmem:[%s201_s25 + $0x28] sm:$0xff] }
  0x11   : > { %675 = vmatmul.mubr.msk.f32.vlgmr.msra.gmra.mxu0 %vm240_vm0, %v216_v4  ;;  %687 = vmatmul.mubr.msk.f32.vlgmr.msra.gmra.mxu1 %vm240_vm0, %v224_v5  ;;  %v226_v9 = vld [vmem:[%s201_s25 + $0x58] sm:$0xff]  ;;  %v227_v11 = vld [vmem:[%s201_s25 + $0x60] sm:$0xff]  ;;  %v228_v13 = vld [vmem:[%s201_s25 + $0x68] sm:$0xff] }
  0x12   : > { %677 = vmatprep.mubr.msk.f32.mxu0 %vm240_vm0, %v217_v6  ;;  %689 = vmatprep.mubr.msk.f32.mxu1 %vm240_vm0, %v225_v7  ;;  %v221_v14 = vld [vmem:[%s201_s25 + $0x30] sm:$0xff]  ;;  %v222_v16 = vld [vmem:[%s201_s25 + $0x38] sm:$0xff] }
  0x13   : > { %v229_v15 = vld [vmem:[%s201_s25 + $0x70] sm:$0xff]  ;;  %v230_v17 = vld [vmem:[%s201_s25 + $0x78] sm:$0xff] }
  0x15   : > { %678 = vmatmul.mubr.msk.f32.gmra.mxu0 %vm240_vm0, %v218_v8  ;;  %690 = vmatmul.mubr.msk.f32.gmra.mxu1 %vm240_vm0, %v226_v9 }
  0x16   : > { %680 = vmatprep.mubr.msk.f32.mxu0 %vm240_vm0, %v219_v10  ;;  %692 = vmatprep.mubr.msk.f32.mxu1 %vm240_vm0, %v227_v11 }
  0x19   : > { %681 = vmatmul.mubr.msk.f32.gmra.mxu0 %vm240_vm0, %v220_v12  ;;  %693 = vmatmul.mubr.msk.f32.gmra.mxu1 %vm240_vm0, %v228_v13 }
  0x1a   : > { %683 = vmatprep.mubr.msk.f32.mxu0 %vm240_vm0, %v221_v14  ;;  %695 = vmatprep.mubr.msk.f32.mxu1 %vm240_vm0, %v229_v15 }
  0x1d   : > { %684 = vmatmul.mubr.msk.f32.gmra.mxu0 %vm240_vm0, %v222_v16  ;;  %696 = vmatmul.mubr.msk.f32.gmra.mxu1 %vm240_vm0, %v230_v17 }
  0xd1   : > { %v676_v19 = vpop.f32.mrf.mxu0  ;;  %v688_v20 = vpop.f32.mrf.mxu1 }
  0xd2   : > { %v361_v21 = vadd.f32 %v676_v19, %v633_v18  ;;  %v401_v22 = vadd.f32 %v688_v20, %v633_v18 }
  0xd3   : > { %v355_v23 = vpop.f32.mrf.mxu0  ;;  %v395_v24 = vpop.f32.mrf.mxu1 }
  0xd4   : > { %436 = vst.msk [vmem:[%s788_s30 + $0x8] sm:$0xff] %vm434_vm1, %v361_v21  ;;  %444 = vst.msk [vmem:[%s788_s30 + $0x48] sm:$0xff] %vm434_vm1, %v401_v22  ;;  %v356_v25 = vadd.f32 %v633_v18, %v355_v23  ;;  %v396_v26 = vadd.f32 %v633_v18, %v395_v24  ;;  %485 = vrot.lane.b32.xlu1 %v401_v22, %s719_s5  ;;  %469 = vrot.lane.b32.xlu0 %v361_v21, %s719_s5 }
  0xd5   : > { %v679_v27 = vpop.f32.mrf.mxu0  ;;  %v691_v28 = vpop.f32.mrf.mxu1 }
  0xd6   : > { %435 = vst.msk [vmem:[%s788_s30] sm:$0xff] %vm434_vm1, %v356_v25  ;;  %443 = vst.msk [vmem:[%s788_s30 + $0x40] sm:$0xff] %vm434_vm1, %v396_v26  ;;  %v371_v29 = vadd.f32 %v679_v27, %v633_v18  ;;  %v411_v30 = vadd.f32 %v691_v28, %v633_v18 }
  0xd7   : > { %v365_v31 = vpop.f32.mrf.mxu0  ;;  %v405_v32 = vpop.f32.mrf.mxu1 }
  0xd8   : > { %438 = vst.msk [vmem:[%s788_s30 + $0x18] sm:$0xff] %vm434_vm1, %v371_v29  ;;  %v366_v33 = vadd.f32 %v633_v18, %v365_v31  ;;  %446 = vst.msk [vmem:[%s788_s30 + $0x58] sm:$0xff] %vm434_vm1, %v411_v30  ;;  %473 = vrot.lane.b32.xlu1 %v371_v29, %s719_s5  ;;  %467 = vrot.lane.b32.xlu0 %v356_v25, %s719_s5  ;;  %v406_v34 = vadd.f32 %v633_v18, %v405_v32 }
  0xd9   : > { %v682_v35 = vpop.f32.mrf.mxu0  ;;  %v694_v36 = vpop.f32.mrf.mxu1 }
  0xda   : > { %437 = vst.msk [vmem:[%s788_s30 + $0x10] sm:$0xff] %vm434_vm1, %v366_v33  ;;  %445 = vst.msk [vmem:[%s788_s30 + $0x50] sm:$0xff] %vm434_vm1, %v406_v34  ;;  %v381_v37 = vadd.f32 %v682_v35, %v633_v18  ;;  %v421_v38 = vadd.f32 %v694_v36, %v633_v18 }
  0xdb   : > { %v375_v39 = vpop.f32.mrf.mxu0  ;;  %v415_v40 = vpop.f32.mrf.mxu1 }
  0xdc   : > { %489 = vrot.lane.b32.xlu1 %v411_v30, %s719_s5  ;;  %483 = vrot.lane.b32.xlu0 %v396_v26, %s719_s5  ;;  %440 = vst.msk [vmem:[%s788_s30 + $0x28] sm:$0xff] %vm434_vm1, %v381_v37  ;;  %v376_v41 = vadd.f32 %v633_v18, %v375_v39  ;;  %448 = vst.msk [vmem:[%s788_s30 + $0x68] sm:$0xff] %vm434_vm1, %v421_v38  ;;  %v416_v42 = vadd.f32 %v633_v18, %v415_v40 }
  0xdd   : > { %v685_v43 = vpop.f32.mrf.mxu0  ;;  %v697_v44 = vpop.f32.mrf.mxu1 }
  0xde   : > { %439 = vst.msk [vmem:[%s788_s30 + $0x20] sm:$0xff] %vm434_vm1, %v376_v41  ;;  %447 = vst.msk [vmem:[%s788_s30 + $0x60] sm:$0xff] %vm434_vm1, %v416_v42  ;;  %v391_v45 = vadd.f32 %v685_v43, %v633_v18  ;;  %v431_v46 = vadd.f32 %v697_v44, %v633_v18 }
  0xdf   : > { %v385_v47 = vpop.f32.mrf.mxu0  ;;  %v425_v48 = vpop.f32.mrf.mxu1 }
  0xe0   : > { %471 = vrot.lane.b32.xlu1 %v366_v33, %s719_s5  ;;  %487 = vrot.lane.b32.xlu0 %v406_v34, %s719_s5  ;;  %442 = vst.msk [vmem:[%s788_s30 + $0x38] sm:$0xff] %vm434_vm1, %v391_v45  ;;  %v386_v49 = vadd.f32 %v633_v18, %v385_v47  ;;  %450 = vst.msk [vmem:[%s788_s30 + $0x78] sm:$0xff] %vm434_vm1, %v431_v46  ;;  %v426_v50 = vadd.f32 %v633_v18, %v425_v48 }
  0xe2   : > { %441 = vst.msk [vmem:[%s788_s30 + $0x30] sm:$0xff] %vm434_vm1, %v386_v49  ;;  %449 = vst.msk [vmem:[%s788_s30 + $0x70] sm:$0xff] %vm434_vm1, %v426_v50 }
  0xe4   : > { %477 = vrot.lane.b32.xlu1 %v381_v37, %s719_s5  ;;  %475 = vrot.lane.b32.xlu0 %v376_v41, %s719_s5 }
  0xe8   : > { %493 = vrot.lane.b32.xlu1 %v421_v38, %s719_s5  ;;  %491 = vrot.lane.b32.xlu0 %v416_v42, %s719_s5 }
  0xec   : > { %481 = vrot.lane.b32.xlu1 %v391_v45, %s719_s5  ;;  %479 = vrot.lane.b32.xlu0 %v386_v49, %s719_s5 }
  0xf0   : > { %497 = vrot.lane.b32.xlu1 %v431_v46, %s719_s5  ;;  %495 = vrot.lane.b32.xlu0 %v426_v50, %s719_s5 }
 0x146   : > { %v486_v51 = vpop.permute.xlu1 %485  ;;  %v470_v52 = vpop.permute.xlu0 %469 }
 0x147   : > { %525 = vst.msk [vmem:[%s842_s8 + $0x48] sm:$0xff] %vm515_vm2, %v486_v51  ;;  %517 = vst.msk [vmem:[%s842_s8 + $0x8] sm:$0xff] %vm515_vm2, %v470_v52 }
 0x14a   : > { %v474_v53 = vpop.permute.xlu1 %473  ;;  %v468_v54 = vpop.permute.xlu0 %467 }
 0x14b   : > { %519 = vst.msk [vmem:[%s842_s8 + $0x18] sm:$0xff] %vm515_vm2, %v474_v53  ;;  %516 = vst.msk [vmem:[%s842_s8] sm:$0xff] %vm515_vm2, %v468_v54 }
 0x14e   : > { %v490_v55 = vpop.permute.xlu1 %489  ;;  %v484_v56 = vpop.permute.xlu0 %483 }
 0x14f   : > { %527 = vst.msk [vmem:[%s842_s8 + $0x58] sm:$0xff] %vm515_vm2, %v490_v55  ;;  %524 = vst.msk [vmem:[%s842_s8 + $0x40] sm:$0xff] %vm515_vm2, %v484_v56 }
 0x152   : > { %v472_v57 = vpop.permute.xlu1 %471  ;;  %v488_v58 = vpop.permute.xlu0 %487 }
 0x153   : > { %518 = vst.msk [vmem:[%s842_s8 + $0x10] sm:$0xff] %vm515_vm2, %v472_v57  ;;  %526 = vst.msk [vmem:[%s842_s8 + $0x50] sm:$0xff] %vm515_vm2, %v488_v58 }
 0x156   : > { %v478_v59 = vpop.permute.xlu1 %477  ;;  %v476_v60 = vpop.permute.xlu0 %475 }
 0x157   : > { %521 = vst.msk [vmem:[%s842_s8 + $0x28] sm:$0xff] %vm515_vm2, %v478_v59  ;;  %520 = vst.msk [vmem:[%s842_s8 + $0x20] sm:$0xff] %vm515_vm2, %v476_v60 }
 0x15a   : > { %v494_v61 = vpop.permute.xlu1 %493  ;;  %v492_v62 = vpop.permute.xlu0 %491 }
 0x15b   : > { %529 = vst.msk [vmem:[%s842_s8 + $0x68] sm:$0xff] %vm515_vm2, %v494_v61  ;;  %528 = vst.msk [vmem:[%s842_s8 + $0x60] sm:$0xff] %vm515_vm2, %v492_v62 }
 0x15e   : > { %v482_v63 = vpop.permute.xlu1 %481  ;;  %v480_v0 = vpop.permute.xlu0 %479 }
 0x15f   : > { %523 = vst.msk [vmem:[%s842_s8 + $0x38] sm:$0xff] %vm515_vm2, %v482_v63  ;;  %522 = vst.msk [vmem:[%s842_s8 + $0x30] sm:$0xff] %vm515_vm2, %v480_v0 }
 0x162   : > { %v498_v1 = vpop.permute.xlu1 %497  ;;  %v496_v2 = vpop.permute.xlu0 %495 }
 0x163   : > { %531 = vst.msk [vmem:[%s842_s8 + $0x78] sm:$0xff] %vm515_vm2, %v498_v1  ;;  %530 = vst.msk [vmem:[%s842_s8 + $0x70] sm:$0xff] %vm515_vm2, %v496_v2 }
 0x164 PF: > { %s15_s15 = sadd.s32 1, %s717_s15  }
 0x165   : > { %p12_p4 = scmp.ge.s32.totalorder %s15_s15, 4  }
 0x167   :  { %14 = sbr.rel (!%p12_p4) target bundleno = 1 (0x1), region = 74 }

</bundles_post_ra>
